<compile_context>
chip_gen: v6e
topology: v6e:2x2x1
jax: 0.10.0
libtpu: 0.0.40
codegen_flags: <defaults>
</compile_context>

<pallas_src>
import functools

import jax
import jax.numpy as jnp
from jax.experimental import pallas as pl
from jax.experimental.pallas import tpu as pltpu


def _center_loss_tile_kernel(dist_ref, tgt_ref, sum_ref, cnt_ref, *, radius):
    """One batch-row tile: (TB, C) distances + (TB, 1) labels ->
    per-tile masked sum and known-row count, each a (1, 1, 1) output block."""
    d = dist_ref[...].astype(jnp.float32)            # (TB, C); upcast bf16 -> f32 after DMA
    t = tgt_ref[...]                                 # (TB, 1) int32; pads are -1
    TB, C = d.shape

    classes = jax.lax.broadcasted_iota(jnp.int32, (TB, C), 1)   # class id per lane/column
    onehot = (t == classes).astype(jnp.float32)      # target.eq(classes); all-zero if t < 0
    known = (t >= 0).astype(jnp.float32)             # (TB, 1) known-sample mask

    dist = jnp.maximum(d - radius, 0.0) * onehot     # relu(d - r) * mask
    v = jnp.clip(dist, 1e-12, 1e12)                  # clamp(min=1e-12, max=1e12)

    # Per-tile partials (unknown / padded rows contribute exactly 0 to both).
    sum_ref[...] = jnp.sum(v * known, keepdims=True)[None]   # (1, 1, 1)
    cnt_ref[...] = jnp.sum(known, keepdims=True)[None]       # (1, 1, 1)


def _choose_row_block(batch, n_classes, itemsize, sublane, target_bytes=4 << 20):
    """Largest sublane-multiple row count whose (rows, C) block is ~<= 4 MiB."""
    rows = target_bytes // max(1, n_classes * itemsize)
    rows = max(sublane, min(1024, (int(rows) // sublane) * sublane))
    batch_padded = -(-batch // sublane) * sublane
    return min(rows, batch_padded)


def center_loss(distmat, target, radius=0.0, *, row_block=None):
    """distmat: (B, C) float (f32 or bf16), target: (B,) int (negative => OOD).

    Returns the scalar CenterLoss forward value (matches the PyTorch module).
    """
    B, C = distmat.shape
    tgt2 = target.reshape(B, 1).astype(jnp.int32)

    itemsize = jnp.dtype(distmat.dtype).itemsize
    sublane = max(8, 32 // itemsize)                 # 8 for f32, 16 for bf16

    if row_block is None:
        row_block = _choose_row_block(B, C, itemsize, sublane)
    row_block = max(sublane, (int(row_block) // sublane) * sublane)

    num_tiles = pl.cdiv(B, row_block)
    b_pad = num_tiles * row_block
    if b_pad != B:
        # Padded rows get target = -1 ("unknown") -> contribute 0 to sum & count.
        distmat = jnp.pad(distmat, ((0, b_pad - B), (0, 0)))
        tgt2 = jnp.pad(tgt2, ((0, b_pad - B), (0, 0)), constant_values=-1)

    partial_sums, partial_cnts = pl.pallas_call(
        functools.partial(_center_loss_tile_kernel, radius=float(radius)),
        grid=(num_tiles,),
        in_specs=[
            pl.BlockSpec((row_block, C), lambda i: (i, 0)),   # distmat row tile (VMEM)
            pl.BlockSpec((row_block, 1), lambda i: (i, 0)),   # target row tile (VMEM, not SMEM)
        ],
        out_specs=(
            pl.BlockSpec((1, 1, 1), lambda i: (i, 0, 0)),
            pl.BlockSpec((1, 1, 1), lambda i: (i, 0, 0)),
        ),
        out_shape=(
            jax.ShapeDtypeStruct((num_tiles, 1, 1), jnp.float32),
            jax.ShapeDtypeStruct((num_tiles, 1, 1), jnp.float32),
        ),
        compiler_params=pltpu.CompilerParams(
            dimension_semantics=("parallel",),       # no cross-tile carry -> megacore-safe
        ),
    )(distmat, tgt2)

    s = jnp.sum(partial_sums)                        # tiny final reduce in JAX
    n = jnp.sum(partial_cnts)
    denom = jnp.maximum(n, 1.0) * jnp.float32(C)     # mean over the filtered (B_known, C) matrix
    return jnp.where(n > 0, s / denom, jnp.float32(0.0))


def _reference_center_loss(distmat, target, radius=0.0):
    """Plain-JAX eager reference mirroring the PyTorch forward exactly."""
    known = target >= 0
    if bool(jnp.any(known)):
        d = distmat[known].astype(jnp.float32)
        t = target[known]
        C = d.shape[1]
        classes = jnp.arange(C, dtype=t.dtype)
        mask = (t[:, None] == classes[None, :]).astype(jnp.float32)
        dist = jnp.maximum(d - radius, 0.0) * mask
        return jnp.clip(dist, 1e-12, 1e12).mean()
    return jnp.float32(0.0)


if __name__ == "__main__":
    n_classes, n_dim = 16, 32
    B = 20
    magnitude, radius = 1.0, 0.0

    key = jax.random.PRNGKey(0)
    k_feat, k_tgt, k_ctr = jax.random.split(key, 3)

    # Deterministic center init mirroring CenterLoss._init_centers:
    #   eye * magnitude if n_classes == n_dim (fixed), else normal init.
    if n_classes == n_dim:
        centers = jnp.eye(n_classes, n_dim, dtype=jnp.float32) * magnitude
    else:
        centers = jax.random.normal(k_ctr, (n_classes, n_dim), dtype=jnp.float32)

    # Example glue (not part of the forward): squared euclidean distance of each
    # sample to each class center -> (B, C).
    feats = jax.random.normal(k_feat, (B, n_dim), dtype=jnp.float32)
    distmat = jnp.sum((feats[:, None, :] - centers[None, :, :]) ** 2, axis=-1)

    # Labels in [-1, n_classes); -1 marks OOD samples that must be ignored.
    target = jax.random.randint(k_tgt, (B,), -1, n_classes, dtype=jnp.int32)

    # f32 path; small row_block so the test exercises multiple grid tiles + padding.
    loss = center_loss(distmat, target, radius=radius, row_block=8)
    jax.block_until_ready(loss)
    ref = _reference_center_loss(distmat, target, radius=radius)
    assert jnp.allclose(loss, ref, rtol=1e-5, atol=1e-7), (float(loss), float(ref))

    # bf16 ingestion path (halved HBM bytes), compared to an f32 reference built
    # from the same bf16-rounded values.
    loss_bf16 = center_loss(distmat.astype(jnp.bfloat16), target, radius=radius)
    jax.block_until_ready(loss_bf16)
    ref_bf16 = _reference_center_loss(distmat.astype(jnp.bfloat16), target, radius=radius)
    assert jnp.allclose(loss_bf16, ref_bf16, rtol=1e-5, atol=1e-6), (
        float(loss_bf16), float(ref_bf16))

    # All-unknown batch must yield exactly 0.0 (the torch `else` branch).
    loss_ood = center_loss(distmat, jnp.full((B,), -1, jnp.int32), radius=radius)
    jax.block_until_ready(loss_ood)
    assert float(loss_ood) == 0.0, float(loss_ood)

    print("KERNEL_OK")
</pallas_src>

<mosaic_0001>
module attributes {stable_mosaic.version = 11 : i64} {
  func.func @_center_loss_tile_kernel(%arg0: i32, %arg1: memref<8x16xf32, #tpu.memory_space<vmem>>, %arg2: memref<8x1xi32, #tpu.memory_space<vmem>>, %arg3: memref<1x1x1xf32, #tpu.memory_space<vmem>>, %arg4: memref<1x1x1xf32, #tpu.memory_space<vmem>>) attributes {dimension_semantics = [#tpu.dimension_semantics<parallel>], iteration_bounds = array<i64: 3>, scalar_prefetch = 0 : i64, scratch_operands = 0 : i64, tpu.core_type = #tpu.core_type<tc>, window_params = [{transform_indices = @transform_0, window_bounds = array<i64: 8, 16>}, {transform_indices = @transform_1, window_bounds = array<i64: 8, 1>}, {transform_indices = @transform_2, window_bounds = array<i64: 1, 1, 1>}, {transform_indices = @transform_3, window_bounds = array<i64: 1, 1, 1>}]} {
    %c0 = arith.constant 0 : index
    %c0_0 = arith.constant 0 : index
    %0 = vector.load %arg1[%c0, %c0_0] : memref<8x16xf32, #tpu.memory_space<vmem>>, vector<8x16xf32>
    %c0_1 = arith.constant 0 : index
    %c0_2 = arith.constant 0 : index
    %1 = vector.load %arg2[%c0_1, %c0_2] : memref<8x1xi32, #tpu.memory_space<vmem>>, vector<8x1xi32>
    %2 = tpu.iota {dimensions = array<i32: 1>} : vector<8x16xi32>
    %3 = vector.broadcast %1 : vector<8x1xi32> to vector<8x16xi32>
    %4 = arith.cmpi eq, %3, %2 : vector<8x16xi32>
    %5 = arith.extui %4 : vector<8x16xi1> to vector<8x16xi32>
    %6 = arith.sitofp %5 : vector<8x16xi32> to vector<8x16xf32>
    %c0_i32 = arith.constant 0 : i32
    %7 = vector.broadcast %c0_i32 : i32 to vector<8x1xi32>
    %8 = arith.cmpi sge, %1, %7 : vector<8x1xi32>
    %9 = arith.extui %8 : vector<8x1xi1> to vector<8x1xi32>
    %10 = arith.sitofp %9 : vector<8x1xi32> to vector<8x1xf32>
    %cst = arith.constant 0.000000e+00 : f32
    %11 = vector.broadcast %cst : f32 to vector<8x16xf32>
    %12 = arith.subf %0, %11 : vector<8x16xf32>
    %cst_3 = arith.constant 0.000000e+00 : f32
    %13 = vector.broadcast %cst_3 : f32 to vector<8x16xf32>
    %14 = arith.maximumf %12, %13 : vector<8x16xf32>
    %15 = arith.mulf %14, %6 : vector<8x16xf32>
    %cst_4 = arith.constant 9.99999996E-13 : f32
    %cst_5 = arith.constant 9.99999995E+11 : f32
    %16 = vector.broadcast %cst_4 : f32 to vector<8x16xf32>
    %17 = arith.maximumf %16, %15 : vector<8x16xf32>
    %18 = vector.broadcast %cst_5 : f32 to vector<8x16xf32>
    %19 = arith.minimumf %18, %17 : vector<8x16xf32>
    %20 = vector.broadcast %10 : vector<8x1xf32> to vector<8x16xf32>
    %21 = arith.mulf %19, %20 : vector<8x16xf32>
    %22 = vector.shape_cast %21 : vector<8x16xf32> to vector<1x8x16xf32>
    %cst_6 = arith.constant dense<0.000000e+00> : vector<1xf32>
    %23 = vector.multi_reduction <add>, %22, %cst_6 [1, 2] : vector<1x8x16xf32> to vector<1xf32>
    %24 = vector.shape_cast %23 : vector<1xf32> to vector<1x1x1xf32>
    %25 = vector.extract %24[0, 0, 0] : f32 from vector<1x1x1xf32>
    %26 = vector.broadcast %25 : f32 to vector<1x1xf32>
    %27 = vector.shape_cast %26 : vector<1x1xf32> to vector<1x1x1xf32>
    %c0_7 = arith.constant 0 : index
    %c0_8 = arith.constant 0 : index
    %c0_9 = arith.constant 0 : index
    %28 = vector.load %arg3[%c0_7, %c0_8, %c0_9] : memref<1x1x1xf32, #tpu.memory_space<vmem>>, vector<1x1x1xf32>
    tpu.vector_store %arg3[%c0_7, %c0_8, %c0_9], %27 {strides = array<i32>} : memref<1x1x1xf32, #tpu.memory_space<vmem>>, vector<1x1x1xf32>,
    %29 = vector.shape_cast %10 : vector<8x1xf32> to vector<1x8x1xf32>
    %cst_10 = arith.constant dense<0.000000e+00> : vector<1xf32>
    %30 = vector.multi_reduction <add>, %29, %cst_10 [1, 2] : vector<1x8x1xf32> to vector<1xf32>
    %31 = vector.shape_cast %30 : vector<1xf32> to vector<1x1x1xf32>
    %32 = vector.extract %31[0, 0, 0] : f32 from vector<1x1x1xf32>
    %33 = vector.broadcast %32 : f32 to vector<1x1xf32>
    %34 = vector.shape_cast %33 : vector<1x1xf32> to vector<1x1x1xf32>
    %c0_11 = arith.constant 0 : index
    %c0_12 = arith.constant 0 : index
    %c0_13 = arith.constant 0 : index
    %35 = vector.load %arg4[%c0_11, %c0_12, %c0_13] : memref<1x1x1xf32, #tpu.memory_space<vmem>>, vector<1x1x1xf32>
    tpu.vector_store %arg4[%c0_11, %c0_12, %c0_13], %34 {strides = array<i32>} : memref<1x1x1xf32, #tpu.memory_space<vmem>>, vector<1x1x1xf32>,
    return
  }
  func.func @transform_0(%arg0: i32) -> (i32, i32) {
    %c0_i32 = arith.constant 0 : i32
    %c0_i32_0 = arith.constant 0 : i32
    return %arg0, %c0_i32 : i32, i32
  }
  func.func @transform_1(%arg0: i32) -> (i32, i32) {
    %c0_i32 = arith.constant 0 : i32
    %c0_i32_0 = arith.constant 0 : i32
    return %arg0, %c0_i32 : i32, i32
  }
  func.func @transform_2(%arg0: i32) -> (i32, i32, i32) {
    %c0_i32 = arith.constant 0 : i32
    %c0_i32_0 = arith.constant 0 : i32
    %c0_i32_1 = arith.constant 0 : i32
    return %arg0, %c0_i32, %c0_i32_0 : i32, i32, i32
  }
  func.func @transform_3(%arg0: i32) -> (i32, i32, i32) {
    %c0_i32 = arith.constant 0 : i32
    %c0_i32_0 = arith.constant 0 : i32
    %c0_i32_1 = arith.constant 0 : i32
    return %arg0, %c0_i32, %c0_i32_0 : i32, i32, i32
  }
}

</mosaic_0001>

<bundles_post_ra>
// kernel: tpu_custom_call.1
= control target key start
LH: loop header
LB: loop body
LE: loop exit
PB: predicated region body
PF: predicated region fallthrough
CT: control target
= control target key end

     0   :  { %s380_s12 = smov 0   ;;  %s408_s0 = inlined_call_operand.vmem [shape: f32[24,16], index: 0, kind: input, shape index: {}]   ;;  %s409_s1 = inlined_call_operand.vmem [shape: s32[24,1], index: 1, kind: input, shape index: {}]   ;;  %s410_s2 = inlined_call_operand.vmem [shape: f32[3,1,1], index: 2, kind: output, shape index: {0}]   ;;  %s411_s3 = inlined_call_operand.vmem [shape: f32[3,1,1], index: 3, kind: output, shape index: {1}]  }
   0x1 LB: > { %s324_s13 = sadd.s32 4294967295, %s356_s12   ;;  %p328_p0 = scmp.ge.s32.totalorder %s356_s12, 1  ;;  %s356_s12 = sphi %s380_s12, %s14_s12  }
   0x2   : > { %p148_p1 = scmp.lt.s32.totalorder %s356_s12, 4 }
   0x4   : > { %p149_p2 = pnand %p328_p0, %p148_p1 }
   0x5   : > { %p176_p3 = scmp.lt.s32.totalorder (!%p149_p2), %s324_s13, 2 }
   0x6   : > { %152 = sbr.rel (%p149_p2) target bundleno = 356 (0x164), region = 28 }
   0xb   : > { %v358_v0 = vmov 0   ;;  %s413_s13 = smov (!%p176_p3, %s324_s13), 2  ;;  %v359_v2 = vmov 0.0   ;;  %v192_v4 = vlaneseq  ;;  %vm213_vm2 = vcmask 130048  }
   0xc   : > { %349 = vset.pattern.permute.xlu0 %v358_v0  ;;  %s329_s14 = sshll.u32 %s413_s13, 3  ;;  %vm227_vm3 = vcmask 7168   ;;  %s186_s23 = scalar_lea.vmem %s410_s2, %s413_s13  ;;  %vm225_vm4 = vcmask 0  }
   0xd   : > { %s183_s17 = scalar_lea.vmem %s409_s1, %s329_s14  ;;  %s179_s20 = scalar_lea.vmem %s408_s0, %s329_s14  ;;  %v193_v6 = vand.u32 127, %v192_v4 }
   0xe   : > { %v191_v1 = vld [vmem:[%s183_s17] sm:$0xff]  ;;  %s189_s27 = scalar_lea.vmem %s411_s3, %s413_s13 }
   0xf   : > { %195 = vperm.xlu0 %349, %v191_v1   ;;  %vm200_vm0 = vcmp.ge.s32.totalorder %v191_v1, 0  ;;  %v190_v5 = vld [vmem:[%s179_s20] sm:$0xff] }
  0x10   : > { %v332_v3 = vsel %vm200_vm0, 1.0, %v359_v2  ;;  %v203_v7 = vmax.f32 %v190_v5, 0.0 }
  0x11   : > { %v228_v16 = vsel %vm227_vm3, %v332_v3, 0.0 }
  0x13   : > { %209 = vperm.xlu0 %349, %v332_v3  }
  0x8a   : > { %v196_v8 = vpop.permute.xlu0 %195 }
  0x8b   : > { %vm197_vm1 = vcmp.eq.s32.totalorder %v196_v8, %v193_v6 }
  0x8c   : > { %v331_v9 = vsel %vm197_vm1, 1.0, %v359_v2 }
  0x8d   : > { %v204_v10 = vmul.f32 %v331_v9, %v203_v7 }
  0x8e   : > { %v210_v13 = vpop.permute.xlu0 %209 }
  0x8f   : > { %v205_v11 = vmax.f32 %v204_v10, 1e-12 }
  0x91   : > { %v206_v12 = vmin.f32 %v205_v11, 1e+12 }
  0x93   : > { %v212_v14 = vmul.f32 %v210_v13, %v206_v12 }
  0x95   : > { %v214_v15 = vsel %vm213_vm2, %v212_v14, 0.0 }
  0x96   : > { %215 = vadd.xlane.f32.xlu1 %v214_v15 }
  0x9a   : > { %229 = vadd.xlane.f32.xlu1 %v228_v16 }
 0x11f   : > { %v216_v17 = vpop.xlane.xlu1 %215 }
 0x120   : > { %v217_v18 = vrot.slane %v216_v17, 4 }
 0x122   : > { %v218_v19 = vadd.f32 %v217_v18, %v216_v17 }
 0x123   : > { %v230_v20 = vpop.xlane.xlu1 %229 }
 0x124   : > { %v219_v21 = vrot.slane %v218_v19, 2  ;;  %v231_v22 = vrot.slane %v230_v20, 4 }
 0x126   : > { %v232_v23 = vadd.f32 %v231_v22, %v230_v20  ;;  %v220_v24 = vadd.f32 %v219_v21, %v218_v19 }
 0x128   : > { %v233_v25 = vrot.slane %v232_v23, 2  ;;  %v221_v26 = vrot.slane %v220_v24, 1 }
 0x12a   : > { %v234_v27 = vadd.f32 %v233_v25, %v232_v23  ;;  %v222_v28 = vadd.f32 %v221_v26, %v220_v24 }
 0x12c   : > { %335 = vpush %v222_v28  ;;  %v235_v29 = vrot.slane %v234_v27, 1 }
 0x12e   : > { %v236_v30 = vadd.f32 %v235_v29, %v234_v27 }
 0x130   : > { %337 = vpush %v236_v30 }
 0x15d   : > { %s336_s24 = spop %335 }
 0x15e   : > { %v224_v31 = vstv %s336_s24 }
 0x15f   : > { %226 = vst.msk [vmem:[%s186_s23] sm:$0x1] %vm225_vm4, %v224_v31 }
 0x161   : > { %s338_s28 = spop %337 }
 0x162   : > { %v238_v32 = vstv %s338_s28 }
 0x163   : > { %239 = vst.msk [vmem:[%s189_s27] sm:$0x1] %vm225_vm4, %v238_v32 }
 0x164 PF: > { %s14_s12 = sadd.s32 1, %s356_s12  }
 0x165   : > { %p11_p4 = scmp.ge.s32.totalorder %s14_s12, 5  }
 0x167   :  { %13 = sbr.rel (!%p11_p4) target bundleno = 1 (0x1), region = 73 }

</bundles_post_ra>
